<compile_context>
chip_gen: v5e
topology: v5e:2x2
jax: 0.10.0
libtpu: 0.0.40
codegen_flags: <defaults>
</compile_context>

<pallas_src>
import numpy as np
import jax
import jax.numpy as jnp
from jax import lax
from jax.experimental import pallas as pl
from jax.experimental.pallas import tpu as pltpu


# ----------------------------------------------------------------------------
# helpers
# ----------------------------------------------------------------------------
def _ceil(a, m):
    return ((a + m - 1) // m) * m


def _full_spec(shape):
    # full-extent block (legal for arbitrary dims since block == array shape)
    return pl.BlockSpec(shape, lambda i: (0,) * len(shape))


_ARB1 = pltpu.CompilerParams(dimension_semantics=("arbitrary",))
_PAR1 = pltpu.CompilerParams(dimension_semantics=("parallel",))


# ----------------------------------------------------------------------------
# Kernel 1: fused 2-layer segmentation MLP (UResNet stand-in), row-tiled
# ----------------------------------------------------------------------------
def _seg_mlp_kernel(x_ref, w0_ref, b0_ref, w1_ref, b1_ref, o_ref):
    # hidden activation never leaves VMEM / vregs
    h = jnp.dot(x_ref[...], w0_ref[...], preferred_element_type=jnp.float32)
    h = jnp.maximum(h + b0_ref[...], 0.0)
    o_ref[...] = jnp.dot(h.astype(jnp.bfloat16), w1_ref[...],
                         preferred_element_type=jnp.float32) + b1_ref[...]


def pallas_seg_mlp(feat, w0, b0, w1, b1, tm=512):
    """logits = relu(feat @ w0 + b0) @ w1 + b1, fused, bf16 operands / f32 acc."""
    N, K = feat.shape
    H = w0.shape[1]
    O = w1.shape[1]
    TM = min(tm, _ceil(N, 8))
    Npad = _ceil(N, TM)
    xp = jnp.pad(feat, ((0, Npad - N), (0, 0))).astype(jnp.bfloat16)
    out = pl.pallas_call(
        _seg_mlp_kernel,
        out_shape=jax.ShapeDtypeStruct((Npad, O), jnp.float32),
        grid=(Npad // TM,),
        in_specs=[pl.BlockSpec((TM, K), lambda i: (i, 0)),
                  pl.BlockSpec((K, H), lambda i: (0, 0)),
                  pl.BlockSpec((1, H), lambda i: (0, 0)),
                  pl.BlockSpec((H, O), lambda i: (0, 0)),
                  pl.BlockSpec((1, O), lambda i: (0, 0))],
        out_specs=pl.BlockSpec((TM, O), lambda i: (i, 0)),
        compiler_params=_PAR1,
    )(xp,
      w0.astype(jnp.bfloat16), b0.reshape(1, H).astype(jnp.float32),
      w1.astype(jnp.bfloat16), b1.reshape(1, O).astype(jnp.float32))
    return out[:N]


# ----------------------------------------------------------------------------
# Kernel 2: cluster segment-mean as tiled reduction over the voxel axis
#   member (C, Npad) x x_aug (Npad, 5=[x,y,z,E,1]) -> [centroid, meanE, size]
# ----------------------------------------------------------------------------
def _segmean_kernel(m_ref, x_ref, o_ref):
    k = pl.program_id(0)

    @pl.when(k == 0)
    def _():
        o_ref[...] = jnp.zeros_like(o_ref)

    o_ref[...] += jnp.dot(m_ref[...], x_ref[...], preferred_element_type=jnp.float32)

    @pl.when(k == pl.num_programs(0) - 1)
    def _():
        s = o_ref[...]                                   # (C, F); last col = count
        inv = pl.reciprocal(jnp.maximum(s[:, s.shape[1] - 1:], 1.0), approx=True)
        is_mean_col = lax.broadcasted_iota(jnp.int32, s.shape, 1) < (s.shape[1] - 1)
        o_ref[...] = jnp.where(is_mean_col, s * inv, s)  # mean cols / raw size col


def pallas_segmean(member_bf16, x_aug_bf16, tn):
    C, Npad = member_bf16.shape
    F = x_aug_bf16.shape[1]
    return pl.pallas_call(
        _segmean_kernel,
        out_shape=jax.ShapeDtypeStruct((C, F), jnp.float32),
        grid=(Npad // tn,),
        in_specs=[pl.BlockSpec((C, tn), lambda k: (0, k)),
                  pl.BlockSpec((tn, F), lambda k: (k, 0))],
        out_specs=pl.BlockSpec((C, F), lambda k: (0, 0)),   # resident accumulator
        compiler_params=_ARB1,
    )(member_bf16, x_aug_bf16)


# ----------------------------------------------------------------------------
# Kernel 3: pairwise centroid distance (Gram + norms + sqrt fused)
# ----------------------------------------------------------------------------
def _pdist_kernel(a_ref, bt_ref, o_ref):
    d2 = jnp.dot(a_ref[...], bt_ref[...], preferred_element_type=jnp.float32)
    o_ref[...] = jnp.sqrt(jnp.maximum(d2, 0.0))


def pallas_pairwise_dist(cent):
    """dist[i,j] = || c_i - c_j || via augmented matmul [c,|c|^2,1] @ [-2c,1,|c|^2]^T."""
    C = cent.shape[0]
    sq = jnp.sum(cent * cent, axis=1, keepdims=True)
    ones = jnp.ones_like(sq)
    a = jnp.concatenate([cent, sq, ones], axis=1)            # (C, 5)
    bt = jnp.concatenate([-2.0 * cent, ones, sq], axis=1).T  # (5, C)  (tiny XLA transpose)
    K = a.shape[1]
    return pl.pallas_call(
        _pdist_kernel,
        out_shape=jax.ShapeDtypeStruct((C, C), jnp.float32),
        grid=(1,),
        in_specs=[_full_spec((C, K)), _full_spec((K, C))],
        out_specs=_full_spec((C, C)),
        compiler_params=_ARB1,
    )(a, bt)


# ----------------------------------------------------------------------------
# Kernel 4: fused node predictor (attention-GNN stand-in)
#   h = relu(x @ W0 + b0); msg = A @ h; pred = [h, msg] @ W1 + b1
# ----------------------------------------------------------------------------
def _node_gnn_kernel(x_ref, a_ref, w0_ref, b0_ref, w1h_ref, w1m_ref, b1_ref,
                     pred_ref, h_ref):
    h = jnp.maximum(jnp.dot(x_ref[...], w0_ref[...],
                            preferred_element_type=jnp.float32) + b0_ref[...], 0.0)
    msg = jnp.dot(a_ref[...], h, preferred_element_type=jnp.float32)
    pred_ref[...] = (jnp.dot(h, w1h_ref[...], preferred_element_type=jnp.float32)
                     + jnp.dot(msg, w1m_ref[...], preferred_element_type=jnp.float32)
                     + b1_ref[...])
    h_ref[...] = h


def pallas_node_gnn(x, A, W0, b0, W1, b1):
    C, Fin = x.shape
    H = W0.shape[1]
    O = W1.shape[1]
    pred, h = pl.pallas_call(
        _node_gnn_kernel,
        out_shape=(jax.ShapeDtypeStruct((C, O), jnp.float32),
                   jax.ShapeDtypeStruct((C, H), jnp.float32)),
        grid=(1,),
        in_specs=[_full_spec((C, Fin)), _full_spec((C, C)),
                  _full_spec((Fin, H)), _full_spec((1, H)),
                  _full_spec((H, O)), _full_spec((H, O)), _full_spec((1, O))],
        out_specs=(_full_spec((C, O)), _full_spec((C, H))),
        compiler_params=_ARB1,
    )(x, A, W0, b0.reshape(1, H).astype(jnp.float32),
      W1[:H], W1[H:], b1.reshape(1, O).astype(jnp.float32))
    return pred, h


# ----------------------------------------------------------------------------
# Kernel 5: fused edge predictor
#   he = relu(e @ W0 + b0); pred = [h_src, h_dst, he] @ W1 + b1
# ----------------------------------------------------------------------------
def _edge_gnn_kernel(hs_ref, hd_ref, e_ref, w0_ref, b0_ref,
                     w1a_ref, w1b_ref, w1c_ref, b1_ref, o_ref):
    he = jnp.maximum(jnp.dot(e_ref[...], w0_ref[...],
                             preferred_element_type=jnp.float32) + b0_ref[...], 0.0)
    o_ref[...] = (jnp.dot(hs_ref[...], w1a_ref[...], preferred_element_type=jnp.float32)
                  + jnp.dot(hd_ref[...], w1b_ref[...], preferred_element_type=jnp.float32)
                  + jnp.dot(he, w1c_ref[...], preferred_element_type=jnp.float32)
                  + b1_ref[...])


def pallas_edge_gnn(hs, hd, e, W0, b0, W1, b1):
    E, H = hs.shape
    Fe = e.shape[1]
    Hh = W0.shape[1]
    O = W1.shape[1]
    return pl.pallas_call(
        _edge_gnn_kernel,
        out_shape=jax.ShapeDtypeStruct((E, O), jnp.float32),
        grid=(1,),
        in_specs=[_full_spec((E, H)), _full_spec((E, H)), _full_spec((E, Fe)),
                  _full_spec((Fe, Hh)), _full_spec((1, Hh)),
                  _full_spec((H, O)), _full_spec((H, O)), _full_spec((Hh, O)),
                  _full_spec((1, O))],
        out_specs=_full_spec((E, O)),
        compiler_params=_ARB1,
    )(hs, hd, e, W0, b0.reshape(1, Hh).astype(jnp.float32),
      W1[:H], W1[H:2 * H], W1[2 * H:], b1.reshape(1, O).astype(jnp.float32))


# ----------------------------------------------------------------------------
# Chain configuration + deterministic parameter init
# ----------------------------------------------------------------------------
CONFIG = dict(
    shower_class=0,
    node_min_size=2,
    edge_max_dist=100.0,
    num_classes=5,
    seg_hidden=32,
    node_feat_dim=16,
)


def init_params(key):
    ks = jax.random.split(key, 12)

    def w(k, shape):
        return 0.2 * jax.random.normal(k, shape, jnp.float32)

    return {
        # UResNet stand-in (per-voxel MLP)
        'Wseg0': w(ks[0], (4, CONFIG['seg_hidden'])), 'bseg0': w(ks[1], (CONFIG['seg_hidden'],)),
        'Wseg1': w(ks[2], (CONFIG['seg_hidden'], CONFIG['num_classes'])), 'bseg1': w(ks[3], (CONFIG['num_classes'],)),
        # node predictor (attention-GNN stand-in)
        'Wn0': w(ks[4], (5, CONFIG['node_feat_dim'])), 'bn0': w(ks[5], (CONFIG['node_feat_dim'],)),
        'Wn1': w(ks[6], (2 * CONFIG['node_feat_dim'], 2)), 'bn1': w(ks[7], (2,)),
        # edge predictor
        'We0': w(ks[8], (11, CONFIG['node_feat_dim'])), 'be0': w(ks[9], (CONFIG['node_feat_dim'],)),
        'We1': w(ks[10], (3 * CONFIG['node_feat_dim'], 2)), 'be1': w(ks[11], (2,)),
    }


# ----------------------------------------------------------------------------
# Forward pass (mirrors ChainDBSCANGNN.forward control flow)
# ----------------------------------------------------------------------------
def chain_forward(data0, params, cfg=CONFIG):
    N = data0.shape[0]
    coords = data0[:, :3]
    energy = data0[:, 4:5]

    # 1-2) UResNet+PPN -> segmentation logits (fused row-tiled Pallas MLP)
    feat = jnp.concatenate([coords, energy], axis=1)                      # (N, 4)
    seg = pallas_seg_mlp(feat, params['Wseg0'], params['bseg0'],
                         params['Wseg1'], params['bseg1'])                # (N, num_classes)
    # TODO(synk): PPN point-proposal branch of UResNetPPN is not implemented (its outputs are unused by this forward).
    result = {'segmentation': [seg]}

    semantic = jnp.argmax(seg, axis=1)                                    # (N,)
    sem_np = np.asarray(semantic)          # host sync (needed by DBSCAN stand-in)
    data_np = np.asarray(data0)
    n_batches = int(np.unique(data_np[:, 3]).shape[0])
    num_classes = cfg['num_classes']

    # 3) DBSCAN -> fragments per semantic class
    # TODO(synk): true DBSCAN is data-dependent / dynamic-shaped (no clean Pallas equivalent);
    #             replaced by a deterministic per-(class,batch) median split on the host.
    frags = [[] for _ in range(num_classes)]
    for c in range(num_classes):
        for b in range(n_batches):
            idx = np.where((sem_np == c) & (data_np[:, 3] == b))[0]
            if idx.size == 0:
                continue
            med = np.median(data_np[idx, 0])
            for part in (idx[data_np[idx, 0] <= med], idx[data_np[idx, 0] > med]):
                if part.size >= cfg['node_min_size']:
                    frags[c].append(part)

    cluster_info = -1.0 * np.ones((N, 3), dtype=data_np.dtype)
    for shape_id, shape_frags in enumerate(frags):
        for frag_id, frag in enumerate(shape_frags):
            cluster_info[frag, 0] = frag_id
            cluster_info[frag, 2] = shape_id

    shower_class = cfg['shower_class']
    if not len(frags[shower_class]):
        # synthetic fallback: pick the most populated class so the GNN path runs deterministically
        shower_class = int(np.bincount(sem_np, minlength=num_classes).argmax())
    if not len(frags[shower_class]):
        return result

    clusts = frags[shower_class]
    C = len(clusts)
    batch_ids = []
    for clust in clusts:
        bid = np.unique(data_np[clust, 3])
        if len(bid) != 1:
            raise ValueError('Found a cluster with mixed batch ids:', bid)
        batch_ids.append(int(bid[0]))
    batch_ids = np.array(batch_ids)

    # membership matrix: int8 on host (small transfer), bf16 on device (exact 0/1)
    TN = min(512, _ceil(N, 128))
    Npad = _ceil(N, TN)
    member = np.zeros((C, Npad), dtype=np.int8)
    for i, clust in enumerate(clusts):
        member[i, clust] = 1
    member_j = jnp.asarray(member).astype(jnp.bfloat16)

    # 4) node encoder: [centroid(3), mean_energy, size] via tiled segment-mean reduction
    x_aug = jnp.concatenate([coords, energy, jnp.ones((N, 1), jnp.float32)], axis=1)
    x_aug = jnp.pad(x_aug, ((0, Npad - N), (0, 0))).astype(jnp.bfloat16)
    x_raw = pallas_segmean(member_j, x_aug, TN)                           # (C, 5)

    # inter_cluster_distance (centroid metric): single fused Pallas kernel
    dist_mat = pallas_pairwise_dist(x_raw[:, :3])                         # (C, C)
    dist_np = np.asarray(dist_mat)         # host sync (needed for graph building)

    # complete_graph (host glue)
    src, dst = [], []
    for i in range(C):
        for j in range(i + 1, C):
            if batch_ids[i] == batch_ids[j] and dist_np[i, j] < cfg['edge_max_dist']:
                src.append(i); dst.append(j)
    edge_index = np.array([src, dst], dtype=np.int64) if len(src) else np.zeros((2, 0), np.int64)
    if edge_index.shape[1] == 0:
        return result

    def edge_feats(eidx):
        s = jnp.asarray(eidx[0].astype(np.int32))
        d = jnp.asarray(eidx[1].astype(np.int32))
        return jnp.concatenate([x_raw[s], x_raw[d], dist_mat[s, d][:, None]], axis=1)  # (E, 11)

    # mirrors the torch edge_encoder call before node_predictor (the attention-GNN
    # stand-in node predictor below does not consume edge features)
    e = edge_feats(edge_index)

    # 5) node predictor: fused Pallas kernel (linear+relu, dense message matmul, head)
    A = np.zeros((C, C), dtype=np.float32)
    A[edge_index[0], edge_index[1]] = 1.0
    A[edge_index[1], edge_index[0]] = 1.0
    A = A / np.maximum(A.sum(axis=1, keepdims=True), 1.0)
    node_pred, h = pallas_node_gnn(x_raw, jnp.asarray(A),
                                   params['Wn0'], params['bn0'],
                                   params['Wn1'], params['bn1'])          # (C,2), (C,16)

    # per-batch splitting (host glue, mirrors the torch module)
    _, counts = np.unique(data_np[:, 3], return_counts=True)
    vids = np.concatenate([np.arange(int(n)) for n in counts])
    bcids = [np.where(batch_ids == b)[0] for b in range(len(counts))]
    split_clusts = [[vids[clusts[i]] for i in b] for b in bcids]
    node_pred_split = [node_pred[jnp.asarray(b.astype(np.int32))] for b in bcids]
    result.update(dict(node_pred=[node_pred_split], shower_fragments=[split_clusts]))

    # 6) bipartite graph from predicted primaries + edge predictor
    primary_ids = np.asarray(jnp.argmax(node_pred, axis=1))   # host sync (graph building)
    primaries = set(np.nonzero(primary_ids)[0].tolist())
    src2, dst2 = [], []
    for i in primaries:
        for j in range(C):
            if j in primaries:
                continue
            if batch_ids[i] == batch_ids[j] and dist_np[i, j] < cfg['edge_max_dist']:
                src2.append(i); dst2.append(j)
    edge_index2 = np.array([src2, dst2], dtype=np.int64) if len(src2) else np.zeros((2, 0), np.int64)
    if edge_index2.shape[1] < 2:
        return result

    e2 = edge_feats(edge_index2)                                          # (E2, 11)
    s2 = jnp.asarray(edge_index2[0].astype(np.int32))
    d2 = jnp.asarray(edge_index2[1].astype(np.int32))
    edge_pred = pallas_edge_gnn(h[s2], h[d2], e2,
                                params['We0'], params['be0'],
                                params['We1'], params['be1'])             # (E2, 2)

    cids = np.concatenate([np.arange(int(n)) for n in np.unique(batch_ids, return_counts=True)[1]])
    beids = [np.where(batch_ids[edge_index2[0]] == b)[0] for b in range(len(counts))]
    edge_pred_split = [edge_pred[jnp.asarray(b.astype(np.int32))] for b in beids]
    # NOTE: orientation (n_edges, 2) matches `cids[edge_index[:, b]].T` of the torch module
    edge_index_split = [cids[edge_index2[:, b]].T for b in beids]
    result.update(dict(edge_pred=[edge_pred_split], edge_index=[edge_index_split]))
    return result


# ----------------------------------------------------------------------------
if __name__ == "__main__":
    key = jax.random.PRNGKey(0)
    kd, kp = jax.random.split(key)
    params = init_params(kp)

    N = 64  # voxels, batch size 2 (32 voxels each)
    kc, ke = jax.random.split(kd)
    coords = jax.random.uniform(kc, (N, 3), jnp.float32, 0.0, 16.0)
    batch = jnp.concatenate([jnp.zeros((N // 2, 1), jnp.float32),
                             jnp.ones((N // 2, 1), jnp.float32)], axis=0)
    energy = jax.random.uniform(ke, (N, 1), jnp.float32, 0.1, 2.0)
    data0 = jnp.concatenate([coords, batch, energy], axis=1)  # (N, 5) = [x,y,z,batch,E]

    result = chain_forward(data0, params)

    for leaf in jax.tree_util.tree_leaves(result):
        if isinstance(leaf, jax.Array):
            jax.block_until_ready(leaf)

    print("KERNEL_OK")
</pallas_src>

<mosaic_0001>
module attributes {stable_mosaic.version = 11 : i64} {
  func.func @_seg_mlp_kernel(%arg0: i32, %arg1: memref<64x4xbf16, #tpu.memory_space<vmem>>, %arg2: memref<4x32xbf16, #tpu.memory_space<vmem>>, %arg3: memref<1x32xf32, #tpu.memory_space<vmem>>, %arg4: memref<32x5xbf16, #tpu.memory_space<vmem>>, %arg5: memref<1x5xf32, #tpu.memory_space<vmem>>, %arg6: memref<64x5xf32, #tpu.memory_space<vmem>>) attributes {dimension_semantics = [#tpu.dimension_semantics<parallel>], iteration_bounds = array<i64: 1>, scalar_prefetch = 0 : i64, scratch_operands = 0 : i64, tpu.core_type = #tpu.core_type<tc>, window_params = [{transform_indices = @transform_0, window_bounds = array<i64: 64, 4>}, {pipeline_mode = #tpu.pipeline_mode<synchronous>, transform_indices = @transform_1, window_bounds = array<i64: 4, 32>}, {pipeline_mode = #tpu.pipeline_mode<synchronous>, transform_indices = @transform_2, window_bounds = array<i64: 1, 32>}, {pipeline_mode = #tpu.pipeline_mode<synchronous>, transform_indices = @transform_3, window_bounds = array<i64: 32, 5>}, {pipeline_mode = #tpu.pipeline_mode<synchronous>, transform_indices = @transform_4, window_bounds = array<i64: 1, 5>}, {transform_indices = @transform_5, window_bounds = array<i64: 64, 5>}]} {
    %c0 = arith.constant 0 : index
    %c0_0 = arith.constant 0 : index
    %0 = vector.load %arg1[%c0, %c0_0] : memref<64x4xbf16, #tpu.memory_space<vmem>>, vector<64x4xbf16>
    %c0_1 = arith.constant 0 : index
    %c0_2 = arith.constant 0 : index
    %1 = vector.load %arg2[%c0_1, %c0_2] : memref<4x32xbf16, #tpu.memory_space<vmem>>, vector<4x32xbf16>
    %cst = arith.constant dense<0.000000e+00> : vector<64x32xf32>
    %2 = tpu.matmul %0, %1, %cst {dimension_numbers = #tpu.dot_dimension_numbers<[1], [0], [0], [1], [0, 0, 1, 1], [], []>} : vector<64x4xbf16>, vector<4x32xbf16>, vector<64x32xf32> -> vector<64x32xf32>
    %c0_3 = arith.constant 0 : index
    %c0_4 = arith.constant 0 : index
    %3 = vector.load %arg3[%c0_3, %c0_4] : memref<1x32xf32, #tpu.memory_space<vmem>>, vector<1x32xf32>
    %4 = vector.broadcast %3 : vector<1x32xf32> to vector<64x32xf32>
    %5 = arith.addf %2, %4 : vector<64x32xf32>
    %cst_5 = arith.constant 0.000000e+00 : f32
    %6 = vector.broadcast %cst_5 : f32 to vector<64x32xf32>
    %7 = arith.maximumf %5, %6 : vector<64x32xf32>
    %8 = arith.truncf %7 : vector<64x32xf32> to vector<64x32xbf16>
    %c0_6 = arith.constant 0 : index
    %c0_7 = arith.constant 0 : index
    %9 = vector.load %arg4[%c0_6, %c0_7] : memref<32x5xbf16, #tpu.memory_space<vmem>>, vector<32x5xbf16>
    %cst_8 = arith.constant dense<0.000000e+00> : vector<64x5xf32>
    %10 = tpu.matmul %8, %9, %cst_8 {dimension_numbers = #tpu.dot_dimension_numbers<[1], [0], [0], [1], [0, 0, 1, 1], [], []>} : vector<64x32xbf16>, vector<32x5xbf16>, vector<64x5xf32> -> vector<64x5xf32>
    %c0_9 = arith.constant 0 : index
    %c0_10 = arith.constant 0 : index
    %11 = vector.load %arg5[%c0_9, %c0_10] : memref<1x5xf32, #tpu.memory_space<vmem>>, vector<1x5xf32>
    %12 = vector.broadcast %11 : vector<1x5xf32> to vector<64x5xf32>
    %13 = arith.addf %10, %12 : vector<64x5xf32>
    %c0_11 = arith.constant 0 : index
    %c0_12 = arith.constant 0 : index
    %14 = vector.load %arg6[%c0_11, %c0_12] : memref<64x5xf32, #tpu.memory_space<vmem>>, vector<64x5xf32>
    tpu.vector_store %arg6[%c0_11, %c0_12], %13 {strides = array<i32>} : memref<64x5xf32, #tpu.memory_space<vmem>>, vector<64x5xf32>,
    return
  }
  func.func @transform_0(%arg0: i32) -> (i32, i32) {
    %c0_i32 = arith.constant 0 : i32
    %c0_i32_0 = arith.constant 0 : i32
    return %arg0, %c0_i32 : i32, i32
  }
  func.func @transform_1(%arg0: i32) -> (i32, i32) {
    %c0_i32 = arith.constant 0 : i32
    %c0_i32_0 = arith.constant 0 : i32
    %c0_i32_1 = arith.constant 0 : i32
    return %c0_i32, %c0_i32_0 : i32, i32
  }
  func.func @transform_2(%arg0: i32) -> (i32, i32) {
    %c0_i32 = arith.constant 0 : i32
    %c0_i32_0 = arith.constant 0 : i32
    %c0_i32_1 = arith.constant 0 : i32
    return %c0_i32, %c0_i32_0 : i32, i32
  }
  func.func @transform_3(%arg0: i32) -> (i32, i32) {
    %c0_i32 = arith.constant 0 : i32
    %c0_i32_0 = arith.constant 0 : i32
    %c0_i32_1 = arith.constant 0 : i32
    return %c0_i32, %c0_i32_0 : i32, i32
  }
  func.func @transform_4(%arg0: i32) -> (i32, i32) {
    %c0_i32 = arith.constant 0 : i32
    %c0_i32_0 = arith.constant 0 : i32
    %c0_i32_1 = arith.constant 0 : i32
    return %c0_i32, %c0_i32_0 : i32, i32
  }
  func.func @transform_5(%arg0: i32) -> (i32, i32) {
    %c0_i32 = arith.constant 0 : i32
    %c0_i32_0 = arith.constant 0 : i32
    return %arg0, %c0_i32 : i32, i32
  }
}

</mosaic_0001>

<bundles_post_ra>
// kernel: tpu_custom_call.1
= control target key start
LH: loop header
LB: loop body
LE: loop exit
PB: predicated region body
PF: predicated region fallthrough
CT: control target
= control target key end

     0   :  { %vm67_vm0 = vcmask 1041408   ;;  %vm54_vm1 = vcmask 31744   ;;  %vm132_vm2 = vcmask 261120   ;;  %vm174_vm3 = vcmask 39936   ;;  %s323_s1 = inlined_call_operand.vmem [shape: bf16[4,32], index: 1, kind: input, shape index: {}]   ;;  %s324_s0 = inlined_call_operand.vmem [shape: bf16[64,4], index: 0, kind: input, shape index: {}]   ;;  %s325_s2 = inlined_call_operand.vmem [shape: f32[1,32], index: 2, kind: input, shape index: {}]   ;;  %s326_s4 = inlined_call_operand.vmem [shape: f32[1,5], index: 4, kind: input, shape index: {}]   ;;  %s327_s3 = inlined_call_operand.vmem [shape: bf16[32,5], index: 3, kind: input, shape index: {}]   ;;  %s328_s5 = inlined_call_operand.vmem [shape: f32[64,5], index: 5, kind: output, shape index: {}]  }
   0x1   :  { %v29_v0 = vld [vmem:[%s323_s1] sm:$0x3]  ;;  %v220_v3 = vld [vmem:[%s324_s0 + $0x8] sm:$0xff]  ;;  %v221_v4 = vld [vmem:[%s324_s0 + $0x10] sm:$0xff] }
   0x2   :  { %v69_v1 = vsel %vm67_vm0, %v29_v0, 0  ;;  %v219_v2 = vld [vmem:[%s324_s0] sm:$0xff]  ;;  %v222_v5 = vld [vmem:[%s324_s0 + $0x18] sm:$0xff]  ;;  %v224_v6 = vld [vmem:[%s327_s3 + $0x8] sm:$0xff] }
   0x3   :  { %78 = vmatpush.bf16.msra.mxu0 %v69_v1  ;;  %225 = vmatpush.bf16.msra.mxu3 %v69_v1  ;;  %v223_v7 = vld [vmem:[%s327_s3] sm:$0xff] }
   0x4   :  { %151 = vmatpush.bf16.msra.mxu1 %v224_v6  ;;  %226 = vmatpush.bf16.msra.mxu2 %v224_v6  ;;  %v228_v9 = vld [vmem:[%s325_s2] ss:$0 sm:$0xff] }
   0x5   :  { %v229_v37 = vld [vmem:[%s326_s4] ss:$0 sm:$0xff] }
   0x6   :  { %203 = vmatmul.msk.bf16.vlgmr.msra.gmra.mxu0 %vm54_vm1, %v219_v2  ;;  %204 = vmatmul.msk.bf16.vlgmr.msra.gmra.mxu3 %vm54_vm1, %v220_v3 }
   0x8   :  { %152 = vmatpush.bf16.msra.mxu1 %v223_v7  ;;  %227 = vmatpush.bf16.msra.mxu2 %v223_v7 }
  0x16   :  { %205 = vmatmul.msk.bf16.gmra.mxu3 %vm54_vm1, %v221_v4 }
  0x26   :  { %206 = vmatmul.msk.bf16.gmra.mxu3 %vm54_vm1, %v222_v5 }
  0x83   :  { %v80_v8 = vpop.f32.mrf.mxu0 }
  0x84   :  { %v81_v10 = vadd.f32 %v228_v9, %v80_v8 }
  0x86   :  { %v100_v13 = vmax.f32 %v81_v10, 0.0 }
  0x89   :  { %v85_v11 = vpop.f32.mrf.mxu3 }
  0x8a   :  { %v86_v20 = vadd.f32 %v228_v9, %v85_v11 }
  0x8b   :  { %v82_v12 = vpop.f32.mrf.mxu0 }
  0x8c   :  { %v83_v14 = vadd.f32 %v228_v9, %v82_v12  ;;  %v102_v22 = vmax.f32 %v86_v20, 0.0 }
  0x8e   :  { %v101_v15 = vmax.f32 %v83_v14, 0.0 }
  0x90   :  { %v108_v16 = vpack.c.bf16 %v101_v15, %v100_v13 }
  0x91   :  { %v87_v17 = vpop.f32.mrf.mxu3 }
  0x92   :  { %215 = vmatmul.msk.bf16.vlgmr.msra.gmra.mxu1 %vm132_vm2, %v108_v16  ;;  %v88_v18 = vadd.f32 %v228_v9, %v87_v17 }
  0x94   :  { %v103_v21 = vmax.f32 %v88_v18, 0.0 }
  0x96   :  { %v109_v23 = vpack.c.bf16 %v103_v21, %v102_v22 }
  0x99   :  { %v90_v19 = vpop.f32.mrf.mxu3 }
  0x9a   :  { %v91_v24 = vadd.f32 %v228_v9, %v90_v19 }
  0x9c   :  { %v104_v27 = vmax.f32 %v91_v24, 0.0 }
  0xa1   :  { %v92_v25 = vpop.f32.mrf.mxu3 }
  0xa2   :  { %v93_v26 = vadd.f32 %v228_v9, %v92_v25  ;;  %216 = vmatmul.msk.bf16.gmra.mxu1 %vm132_vm2, %v109_v23 }
  0xa4   :  { %v105_v28 = vmax.f32 %v93_v26, 0.0 }
  0xa6   :  { %v110_v29 = vpack.c.bf16 %v105_v28, %v104_v27 }
  0xa8   :  { %217 = vmatmul.msk.bf16.vlgmr.msra.gmra.mxu2 %vm132_vm2, %v110_v29 }
  0xa9   :  { %v95_v30 = vpop.f32.mrf.mxu3 }
  0xaa   :  { %v96_v31 = vadd.f32 %v228_v9, %v95_v30 }
  0xac   :  { %v106_v34 = vmax.f32 %v96_v31, 0.0 }
  0xb1   :  { %v97_v32 = vpop.f32.mrf.mxu3 }
  0xb2   :  { %v98_v33 = vadd.f32 %v228_v9, %v97_v32 }
  0xb4   :  { %v107_v35 = vmax.f32 %v98_v33, 0.0 }
  0xb6   :  { %v111_v36 = vpack.c.bf16 %v107_v35, %v106_v34 }
  0xb8   :  { %218 = vmatmul.msk.bf16.gmra.mxu2 %vm132_vm2, %v111_v36 }
 0x10f   :  { %v154_v38 = vpop.f32.mrf.mxu1 }
 0x110   :  { %v155_v39 = vadd.f32 %v229_v37, %v154_v38 }
 0x112   :  { %175 = vst.msk [vmem:[%s328_s5] sm:$0xff] %vm174_vm3, %v155_v39 }
 0x117   :  { %v156_v40 = vpop.f32.mrf.mxu1 }
 0x118   :  { %v157_v41 = vadd.f32 %v229_v37, %v156_v40 }
 0x11a   :  { %176 = vst.msk [vmem:[%s328_s5 + $0x8] sm:$0xff] %vm174_vm3, %v157_v41 }
 0x11f   :  { %v159_v42 = vpop.f32.mrf.mxu1 }
 0x120   :  { %v160_v43 = vadd.f32 %v229_v37, %v159_v42 }
 0x122   :  { %177 = vst.msk [vmem:[%s328_s5 + $0x10] sm:$0xff] %vm174_vm3, %v160_v43 }
 0x127   :  { %v161_v44 = vpop.f32.mrf.mxu1 }
 0x128   :  { %v162_v45 = vadd.f32 %v229_v37, %v161_v44 }
 0x12a   :  { %178 = vst.msk [vmem:[%s328_s5 + $0x18] sm:$0xff] %vm174_vm3, %v162_v45 }
 0x12b   :  { %v164_v46 = vpop.f32.mrf.mxu2 }
 0x12c   :  { %v165_v47 = vadd.f32 %v229_v37, %v164_v46 }
 0x12e   :  { %179 = vst.msk [vmem:[%s328_s5 + $0x20] sm:$0xff] %vm174_vm3, %v165_v47 }
 0x133   :  { %v166_v48 = vpop.f32.mrf.mxu2 }
 0x134   :  { %v167_v49 = vadd.f32 %v229_v37, %v166_v48 }
 0x136   :  { %180 = vst.msk [vmem:[%s328_s5 + $0x28] sm:$0xff] %vm174_vm3, %v167_v49 }
 0x13b   :  { %v169_v50 = vpop.f32.mrf.mxu2 }
 0x13c   :  { %v170_v51 = vadd.f32 %v229_v37, %v169_v50 }
 0x13e   :  { %181 = vst.msk [vmem:[%s328_s5 + $0x30] sm:$0xff] %vm174_vm3, %v170_v51 }
 0x143   :  { %v171_v52 = vpop.f32.mrf.mxu2 }
 0x144   :  { %v172_v53 = vadd.f32 %v229_v37, %v171_v52 }
 0x146   :  { %182 = vst.msk [vmem:[%s328_s5 + $0x38] sm:$0xff] %vm174_vm3, %v172_v53 }

</bundles_post_ra>
